<compile_context>
chip_gen: v7x
topology: tpu7x:2x2x1
jax: 0.10.0
libtpu: 0.0.40
codegen_flags: <defaults>
</compile_context>

<pallas_src>
import functools

import jax
import jax.numpy as jnp
from jax import lax
from jax.experimental import pallas as pl
from jax.experimental.pallas import tpu as pltpu


# ----------------------------------------------------------------------------- kernel
def _make_tlayer_kernel(kt, cin, cout, act, t, n, bb, hi_precision, approx_gate):
    cout2 = cout * 2 if act == "glu" else cout
    t_out = t - kt + 1
    L = t_out * n

    dot_kwargs = dict(preferred_element_type=jnp.float32)
    if hi_precision:
        # f32-operand path: request full-fp32 MXU contraction (PyTorch-faithful).
        dot_kwargs["precision"] = lax.Precision.HIGHEST

    def _sigmoid(z):
        if approx_gate:
            # exp + approx reciprocal run on the EUP slot -> frees VALU for the
            # gate multiply (bf16 path only; f32 path stays exact).
            return pl.reciprocal(1.0 + jnp.exp(-z), approx=True)
        return jax.nn.sigmoid(z)

    def kernel(x_ref, w_ref, b_ref, o_ref):
        # Weights/bias are grid-invariant: load & broadcast once per block
        # (hoisted out of the per-sample loop; JAX does not CSE broadcast_in_dim).
        w_taps = [w_ref[k] for k in range(kt)]                # each (cout2, cin)
        bias_b = jnp.broadcast_to(b_ref[...], (cout2, L))     # (cout2, L) f32

        for i in range(bb):      # static unroll over the samples packed in this block
            x = x_ref[i]         # (cin, t*n), compute dtype

            # Temporal conv (+ folded residual) as kt accumulating MXU matmuls;
            # no LHS materialization, no concatenate.
            acc = bias_b
            for k in range(kt):
                acc = acc + lax.dot_general(
                    w_taps[k], x[:, k * n:k * n + L],
                    dimension_numbers=(((1,), (0,)), ((), ())),
                    **dot_kwargs)                              # (cout2, L) f32

            if act == "glu":
                out = acc[:cout] * _sigmoid(acc[cout:])
            elif act == "relu":
                out = jnp.maximum(acc, 0.0)
            elif act == "sigmoid":
                out = _sigmoid(acc)
            else:
                out = acc        # PyTorch fall-through: raw tconv output
            o_ref[i] = out.astype(o_ref.dtype)

    return kernel


# ----------------------------------------------------------------------------- planning
@functools.lru_cache(maxsize=None)
def _hw_info():
    """(VMEM capacity bytes, is-multi-TensorCore chip).  Host query, safe fallbacks."""
    kind = ""
    try:
        kind = jax.devices()[0].device_kind.lower()
    except Exception:
        pass
    vmem_cap = None
    try:
        vmem_cap = int(getattr(pltpu.get_tpu_info(), "vmem_capacity_bytes", 0)) or None
    except Exception:
        vmem_cap = None
    if vmem_cap is None:
        # v5e/v6e: 128 MiB per TensorCore; v7x: 64 MiB; unknown: assume the smaller.
        vmem_cap = 128 * 1024 * 1024 if ("v5" in kind or "v6" in kind) else 64 * 1024 * 1024
    multi_tc = "v7" in kind
    return vmem_cap, multi_tc


def _plan_blocks(batch, lane_elems, in_bytes, out_bytes, fixed_bytes, tmp_bytes):
    """Pick samples-per-block (bb) and a VMEM limit, generation-aware."""
    vmem_cap, multi_tc = _hw_info()
    budget = int(vmem_cap * 0.85)          # headroom for compiler temporaries

    def vmem_need(d):
        # in/out blocks are double-buffered by the pipeline; weights are resident;
        # tmp covers the f32 accumulator & activation temporaries.  (No extra x2.)
        return 2 * d * (in_bytes + out_bytes) + fixed_bytes + d * tmp_bytes

    # Pack samples per grid step until ~512 lane elements of MXU work (amortizes
    # the ~0.35us per-step overhead when L is small).
    target = max(1, -(-512 // max(1, lane_elems)))
    best = 1
    for d in range(1, batch + 1):
        if batch % d or d > target or vmem_need(d) > budget:
            continue
        if multi_tc and batch >= 2 and batch // d < 2:
            continue       # keep >=2 "parallel" grid steps so both v7x TCs get work
        best = d
    # TODO(synk): if vmem_need(1) > budget (huge cin / T*N), tile T_out with a
    # (kt-1)-row halo instead of relying on the compiler to fit one oversized block.
    vmem_limit = int(min(budget, max(vmem_need(best) * 5 // 4, 8 * 1024 * 1024)))
    return best, vmem_limit


# ----------------------------------------------------------------------------- wrapper
@functools.partial(jax.jit, static_argnames=("kt", "cin", "cout", "act",
                                              "compute_dtype", "out_dtype"))
def tlayer_forward(x_nchw, w_tconv, b_tconv, w_lin, b_lin, *,
                   kt, cin, cout, act,
                   compute_dtype=jnp.bfloat16, out_dtype=jnp.float32):
    """Pallas tlayer.forward.  PyTorch layouts throughout:

      x_nchw : (B, Cin, T, N)
      w_tconv: (Cout2, Cin, kt, 1)   (Conv2d weight; Cout2 = 2*cout for 'glu')
      b_tconv: (Cout2,)
      w_lin  : (Cout, Cin, 1, 1) or None  (used only when cin > cout, act in glu/relu)
      b_lin  : (Cout,) or None
      compute_dtype: MXU operand dtype.  bf16 (default) halves HBM/VMEM traffic with
        f32 accumulation; f32 uses precision=HIGHEST to match PyTorch numerics.
      out_dtype: output stream dtype (f32 default; bf16 halves writeback bytes).

    Returns (B, Cout, T - kt + 1, N) in out_dtype.
    """
    b, c, t, n = x_nchw.shape
    assert c == cin
    cout2 = cout * 2 if act == "glu" else cout
    t_out = t - kt + 1
    L = t_out * n

    # --- fold the residual branch into the conv weights (trace-time weight edit) ---
    #   residual_o(tau,nu) = sum_c R[o,c] * x[c, tau+kt-1, nu] + r_b[o]
    #   R = w_lin (cin>cout) | I (cin==cout) | zero-padded I (cin<cout)
    # which is exactly an extra contribution to the tap-(kt-1) weight / bias rows [:cout].
    w_taps = jnp.transpose(w_tconv[:, :, :, 0], (2, 0, 1)).astype(jnp.float32)  # (kt, cout2, cin)
    bias = b_tconv.astype(jnp.float32)
    if act in ("glu", "relu"):
        if cin > cout:
            res_w = w_lin.reshape(cout, cin).astype(jnp.float32)
            bias = bias.at[:cout].add(b_lin.astype(jnp.float32))
        else:
            res_w = jnp.eye(cout, cin, dtype=jnp.float32)     # identity / zero-padded identity
        w_taps = w_taps.at[kt - 1, :cout, :].add(res_w)

    # --- glue: metadata-only reshape; cast only if the producer didn't emit bf16 ---
    x_flat = x_nchw.reshape(b, cin, t * n)
    if x_flat.dtype != compute_dtype:
        x_flat = x_flat.astype(compute_dtype)
    w_taps_c = w_taps.astype(compute_dtype)
    bias2d = bias.reshape(cout2, 1)

    # --- generation-aware block / VMEM plan ---
    isz = jnp.dtype(compute_dtype).itemsize
    osz = jnp.dtype(out_dtype).itemsize
    in_b = cin * t * n * isz
    out_b = cout * L * osz
    fixed_b = kt * cout2 * cin * isz + cout2 * 4
    tmp_b = (cout2 + cout) * L * 4 + cin * L * isz     # f32 acc + activated out + x slice
    bb, vmem_limit = _plan_blocks(b, L, in_b, out_b, fixed_b, tmp_b)

    hi_precision = jnp.dtype(compute_dtype) == jnp.dtype(jnp.float32)
    kernel = _make_tlayer_kernel(kt, cin, cout, act, t, n, bb,
                                 hi_precision=hi_precision,
                                 approx_gate=not hi_precision)

    out_flat = pl.pallas_call(
        kernel,
        out_shape=jax.ShapeDtypeStruct((b, cout, L), out_dtype),
        grid_spec=pltpu.PrefetchScalarGridSpec(
            num_scalar_prefetch=0,
            grid=(b // bb,),
            in_specs=[
                pl.BlockSpec((bb, cin, t * n), lambda i: (i, 0, 0)),
                pl.BlockSpec((kt, cout2, cin), lambda i: (0, 0, 0)),   # VMEM-resident
                pl.BlockSpec((cout2, 1), lambda i: (0, 0)),
            ],
            out_specs=pl.BlockSpec((bb, cout, L), lambda i: (i, 0, 0)),
        ),
        compiler_params=pltpu.CompilerParams(
            dimension_semantics=("parallel",),
            vmem_limit_bytes=vmem_limit,
        ),
    )(x_flat, w_taps_c, bias2d)

    # free metadata reshape back to NCHW (T_out, N)
    return out_flat.reshape(b, cout, t_out, n)
    # TODO(synk): for L << 128, fold batch samples into the MXU lane axis
    # ((kt*cin, bb*L) RHS -> unmasked lane-dense stores); only worthwhile when the
    # producer already emits a (Cin, B, T*N)-major layout.


# ----------------------------------------------------------------------------- reference
def tlayer_reference(x_nchw, w_tconv, b_tconv, w_lin, b_lin, *, kt, cin, cout, act):
    """Pure-JAX mirror of the PyTorch forward (correctness check)."""
    b, c, t, n = x_nchw.shape
    t_out = t - kt + 1
    cout2 = cout * 2 if act == "glu" else cout
    hp = lax.Precision.HIGHEST
    x = x_nchw.astype(jnp.float32)

    y = jnp.zeros((b, cout2, t_out, n), jnp.float32)
    for k in range(kt):
        y = y + jnp.einsum("bctn,oc->botn", x[:, :, k:k + t_out, :],
                           w_tconv[:, :, k, 0].astype(jnp.float32), precision=hp)
    y = y + b_tconv.reshape(1, cout2, 1, 1)

    xr = x[:, :, kt - 1:, :]
    if cin > cout:
        xin = jnp.einsum("bctn,oc->botn", xr,
                         w_lin.reshape(cout, cin).astype(jnp.float32),
                         precision=hp) + b_lin.reshape(1, cout, 1, 1)
    elif cin < cout:
        xin = jnp.concatenate(
            [xr, jnp.zeros((b, cout - cin, t_out, n), jnp.float32)], axis=1)
    else:
        xin = xr

    if act == "glu":
        return (y[:, :cout] + xin) * jax.nn.sigmoid(y[:, cout:])
    elif act == "relu":
        return jnp.maximum(y + xin, 0.0)
    elif act == "sigmoid":
        return jax.nn.sigmoid(y)
    return y


# ----------------------------------------------------------------------------- demo
if __name__ == "__main__":
    # output_layer_(nodes, kt, channels, device) == tlayer(kt, channels, channels, 'glu')
    B, CH, T, N, KT = 2, 8, 16, 8, 3
    COUT2 = CH * 2

    key = jax.random.PRNGKey(0)
    k_x, k_w, k_b = jax.random.split(key, 3)
    x = jax.random.normal(k_x, (B, CH, T, N), dtype=jnp.float32)
    w_tconv = jax.random.normal(k_w, (COUT2, CH, KT, 1), dtype=jnp.float32) * 0.1
    b_tconv = jax.random.normal(k_b, (COUT2,), dtype=jnp.float32) * 0.1

    ref = tlayer_reference(x, w_tconv, b_tconv, None, None,
                           kt=KT, cin=CH, cout=CH, act="glu")

    # 1) default path: bf16 MXU operands, f32 accumulation, f32 output
    out = jax.block_until_ready(
        tlayer_forward(x, w_tconv, b_tconv, None, None, kt=KT, cin=CH, cout=CH, act="glu"))
    assert out.shape == (B, CH, T - KT + 1, N), out.shape
    assert jnp.allclose(out, ref, rtol=5e-2, atol=5e-2), float(jnp.max(jnp.abs(out - ref)))

    # 2) f32 operands + precision=HIGHEST (matches PyTorch numerics closely)
    out_f32 = jax.block_until_ready(
        tlayer_forward(x, w_tconv, b_tconv, None, None, kt=KT, cin=CH, cout=CH,
                       act="glu", compute_dtype=jnp.float32))
    assert jnp.allclose(out_f32, ref, rtol=1e-3, atol=1e-3), \
        float(jnp.max(jnp.abs(out_f32 - ref)))

    # 3) cin > cout: 1x1-conv residual folded into the last conv tap
    CIN2, COUT_S = 8, 4
    k2 = jax.random.split(jax.random.PRNGKey(1), 5)
    x2 = jax.random.normal(k2[0], (B, CIN2, T, N), dtype=jnp.float32)
    w2 = jax.random.normal(k2[1], (COUT_S * 2, CIN2, KT, 1), dtype=jnp.float32) * 0.1
    b2 = jax.random.normal(k2[2], (COUT_S * 2,), dtype=jnp.float32) * 0.1
    wl = jax.random.normal(k2[3], (COUT_S, CIN2, 1, 1), dtype=jnp.float32) * 0.1
    bl = jax.random.normal(k2[4], (COUT_S,), dtype=jnp.float32) * 0.1
    ref2 = tlayer_reference(x2, w2, b2, wl, bl, kt=KT, cin=CIN2, cout=COUT_S, act="glu")
    out2 = jax.block_until_ready(
        tlayer_forward(x2, w2, b2, wl, bl, kt=KT, cin=CIN2, cout=COUT_S, act="glu"))
    assert jnp.allclose(out2, ref2, rtol=5e-2, atol=5e-2), \
        float(jnp.max(jnp.abs(out2 - ref2)))

    # 4) cin < cout (zero-padded identity fold) + relu, f32 path
    CIN3, COUT3 = 4, 8
    k3 = jax.random.split(jax.random.PRNGKey(2), 3)
    x3 = jax.random.normal(k3[0], (B, CIN3, T, N), dtype=jnp.float32)
    w3 = jax.random.normal(k3[1], (COUT3, CIN3, KT, 1), dtype=jnp.float32) * 0.1
    b3 = jax.random.normal(k3[2], (COUT3,), dtype=jnp.float32) * 0.1
    ref3 = tlayer_reference(x3, w3, b3, None, None, kt=KT, cin=CIN3, cout=COUT3, act="relu")
    out3 = jax.block_until_ready(
        tlayer_forward(x3, w3, b3, None, None, kt=KT, cin=CIN3, cout=COUT3,
                       act="relu", compute_dtype=jnp.float32))
    assert jnp.allclose(out3, ref3, rtol=1e-3, atol=1e-3), \
        float(jnp.max(jnp.abs(out3 - ref3)))

    # 5) bf16 output stream (halves the dominant HBM write for this mem-bound layer)
    out_bf = jax.block_until_ready(
        tlayer_forward(x, w_tconv, b_tconv, None, None, kt=KT, cin=CH, cout=CH,
                       act="glu", out_dtype=jnp.bfloat16))
    assert jnp.allclose(out_bf.astype(jnp.float32), ref, rtol=1e-1, atol=1e-1), \
        float(jnp.max(jnp.abs(out_bf.astype(jnp.float32) - ref)))

    print("KERNEL_OK")
</pallas_src>

<mosaic_0001>
module attributes {stable_mosaic.version = 11 : i64} {
  func.func @kernel(%arg0: i32, %arg1: memref<2x8x128xbf16, #tpu.memory_space<vmem>>, %arg2: memref<3x16x8xbf16, #tpu.memory_space<vmem>>, %arg3: memref<16x1xf32, #tpu.memory_space<vmem>>, %arg4: memref<2x8x112xf32, #tpu.memory_space<vmem>>) attributes {dimension_semantics = [#tpu.dimension_semantics<parallel>], iteration_bounds = array<i64: 1>, scalar_prefetch = 0 : i64, scratch_operands = 0 : i64, tpu.core_type = #tpu.core_type<tc>, window_params = [{transform_indices = @transform_0, window_bounds = array<i64: 2, 8, 128>}, {pipeline_mode = #tpu.pipeline_mode<synchronous>, transform_indices = @transform_1, window_bounds = array<i64: 3, 16, 8>}, {pipeline_mode = #tpu.pipeline_mode<synchronous>, transform_indices = @transform_2, window_bounds = array<i64: 16, 1>}, {transform_indices = @transform_3, window_bounds = array<i64: 2, 8, 112>}]} {
    %c0 = arith.constant 0 : index
    %c0_0 = arith.constant 0 : index
    %c0_1 = arith.constant 0 : index
    %0 = vector.load %arg2[%c0, %c0_0, %c0_1] : memref<3x16x8xbf16, #tpu.memory_space<vmem>>, vector<1x16x8xbf16>
    %1 = vector.shape_cast %0 : vector<1x16x8xbf16> to vector<16x8xbf16>
    %c1 = arith.constant 1 : index
    %c0_2 = arith.constant 0 : index
    %c0_3 = arith.constant 0 : index
    %2 = vector.load %arg2[%c1, %c0_2, %c0_3] : memref<3x16x8xbf16, #tpu.memory_space<vmem>>, vector<1x16x8xbf16>
    %3 = vector.shape_cast %2 : vector<1x16x8xbf16> to vector<16x8xbf16>
    %c2 = arith.constant 2 : index
    %c0_4 = arith.constant 0 : index
    %c0_5 = arith.constant 0 : index
    %4 = vector.load %arg2[%c2, %c0_4, %c0_5] : memref<3x16x8xbf16, #tpu.memory_space<vmem>>, vector<1x16x8xbf16>
    %5 = vector.shape_cast %4 : vector<1x16x8xbf16> to vector<16x8xbf16>
    %c0_6 = arith.constant 0 : index
    %c0_7 = arith.constant 0 : index
    %6 = vector.load %arg3[%c0_6, %c0_7] : memref<16x1xf32, #tpu.memory_space<vmem>>, vector<16x1xf32>
    %7 = vector.shape_cast %6 : vector<16x1xf32> to vector<16x1xf32>
    %8 = vector.broadcast %7 : vector<16x1xf32> to vector<16x112xf32>
    %c0_8 = arith.constant 0 : index
    %c0_9 = arith.constant 0 : index
    %c0_10 = arith.constant 0 : index
    %9 = vector.load %arg1[%c0_8, %c0_9, %c0_10] : memref<2x8x128xbf16, #tpu.memory_space<vmem>>, vector<1x8x128xbf16>
    %10 = vector.shape_cast %9 : vector<1x8x128xbf16> to vector<8x128xbf16>
    %11 = vector.extract_strided_slice %10 {offsets = [0, 0], sizes = [8, 112], strides = [1, 1]} : vector<8x128xbf16> to vector<8x112xbf16>
    %cst = arith.constant dense<0.000000e+00> : vector<16x112xf32>
    %12 = tpu.matmul %1, %11, %cst {dimension_numbers = #tpu.dot_dimension_numbers<[1], [0], [0], [1], [0, 0, 1, 1], [], []>} : vector<16x8xbf16>, vector<8x112xbf16>, vector<16x112xf32> -> vector<16x112xf32>
    %13 = arith.addf %8, %12 : vector<16x112xf32>
    %14 = vector.extract_strided_slice %10 {offsets = [0, 8], sizes = [8, 112], strides = [1, 1]} : vector<8x128xbf16> to vector<8x112xbf16>
    %cst_11 = arith.constant dense<0.000000e+00> : vector<16x112xf32>
    %15 = tpu.matmul %3, %14, %cst_11 {dimension_numbers = #tpu.dot_dimension_numbers<[1], [0], [0], [1], [0, 0, 1, 1], [], []>} : vector<16x8xbf16>, vector<8x112xbf16>, vector<16x112xf32> -> vector<16x112xf32>
    %16 = arith.addf %13, %15 : vector<16x112xf32>
    %17 = vector.extract_strided_slice %10 {offsets = [0, 16], sizes = [8, 112], strides = [1, 1]} : vector<8x128xbf16> to vector<8x112xbf16>
    %cst_12 = arith.constant dense<0.000000e+00> : vector<16x112xf32>
    %18 = tpu.matmul %5, %17, %cst_12 {dimension_numbers = #tpu.dot_dimension_numbers<[1], [0], [0], [1], [0, 0, 1, 1], [], []>} : vector<16x8xbf16>, vector<8x112xbf16>, vector<16x112xf32> -> vector<16x112xf32>
    %19 = arith.addf %16, %18 : vector<16x112xf32>
    %20 = vector.extract_strided_slice %19 {offsets = [0, 0], sizes = [8, 112], strides = [1, 1]} : vector<16x112xf32> to vector<8x112xf32>
    %21 = vector.extract_strided_slice %19 {offsets = [8, 0], sizes = [8, 112], strides = [1, 1]} : vector<16x112xf32> to vector<8x112xf32>
    %cst_13 = arith.constant 0.000000e+00 : f32
    %22 = vector.broadcast %cst_13 : f32 to vector<8x112xf32>
    %23 = arith.subf %22, %21 : vector<8x112xf32>
    %24 = math.exp %23 : vector<8x112xf32>
    %cst_14 = arith.constant 1.000000e+00 : f32
    %25 = vector.broadcast %cst_14 : f32 to vector<8x112xf32>
    %26 = arith.addf %25, %24 : vector<8x112xf32>
    %27 = tpu.reciprocal %26 {approx = true} : vector<8x112xf32> -> vector<8x112xf32>
    %28 = arith.mulf %20, %27 : vector<8x112xf32>
    %c0_15 = arith.constant 0 : index
    %c0_16 = arith.constant 0 : index
    %c0_17 = arith.constant 0 : index
    %29 = vector.load %arg4[%c0_15, %c0_16, %c0_17] : memref<2x8x112xf32, #tpu.memory_space<vmem>>, vector<1x8x112xf32>
    %30 = vector.shape_cast %29 : vector<1x8x112xf32> to vector<8x112xf32>
    %31 = vector.shape_cast %28 : vector<8x112xf32> to vector<1x8x112xf32>
    tpu.vector_store %arg4[%c0_15, %c0_16, %c0_17], %31 {strides = array<i32>} : memref<2x8x112xf32, #tpu.memory_space<vmem>>, vector<1x8x112xf32>,
    %c1_18 = arith.constant 1 : index
    %c0_19 = arith.constant 0 : index
    %c0_20 = arith.constant 0 : index
    %32 = vector.load %arg1[%c1_18, %c0_19, %c0_20] : memref<2x8x128xbf16, #tpu.memory_space<vmem>>, vector<1x8x128xbf16>
    %33 = vector.shape_cast %32 : vector<1x8x128xbf16> to vector<8x128xbf16>
    %34 = vector.extract_strided_slice %33 {offsets = [0, 0], sizes = [8, 112], strides = [1, 1]} : vector<8x128xbf16> to vector<8x112xbf16>
    %cst_21 = arith.constant dense<0.000000e+00> : vector<16x112xf32>
    %35 = tpu.matmul %1, %34, %cst_21 {dimension_numbers = #tpu.dot_dimension_numbers<[1], [0], [0], [1], [0, 0, 1, 1], [], []>} : vector<16x8xbf16>, vector<8x112xbf16>, vector<16x112xf32> -> vector<16x112xf32>
    %36 = arith.addf %8, %35 : vector<16x112xf32>
    %37 = vector.extract_strided_slice %33 {offsets = [0, 8], sizes = [8, 112], strides = [1, 1]} : vector<8x128xbf16> to vector<8x112xbf16>
    %cst_22 = arith.constant dense<0.000000e+00> : vector<16x112xf32>
    %38 = tpu.matmul %3, %37, %cst_22 {dimension_numbers = #tpu.dot_dimension_numbers<[1], [0], [0], [1], [0, 0, 1, 1], [], []>} : vector<16x8xbf16>, vector<8x112xbf16>, vector<16x112xf32> -> vector<16x112xf32>
    %39 = arith.addf %36, %38 : vector<16x112xf32>
    %40 = vector.extract_strided_slice %33 {offsets = [0, 16], sizes = [8, 112], strides = [1, 1]} : vector<8x128xbf16> to vector<8x112xbf16>
    %cst_23 = arith.constant dense<0.000000e+00> : vector<16x112xf32>
    %41 = tpu.matmul %5, %40, %cst_23 {dimension_numbers = #tpu.dot_dimension_numbers<[1], [0], [0], [1], [0, 0, 1, 1], [], []>} : vector<16x8xbf16>, vector<8x112xbf16>, vector<16x112xf32> -> vector<16x112xf32>
    %42 = arith.addf %39, %41 : vector<16x112xf32>
    %43 = vector.extract_strided_slice %42 {offsets = [0, 0], sizes = [8, 112], strides = [1, 1]} : vector<16x112xf32> to vector<8x112xf32>
    %44 = vector.extract_strided_slice %42 {offsets = [8, 0], sizes = [8, 112], strides = [1, 1]} : vector<16x112xf32> to vector<8x112xf32>
    %cst_24 = arith.constant 0.000000e+00 : f32
    %45 = vector.broadcast %cst_24 : f32 to vector<8x112xf32>
    %46 = arith.subf %45, %44 : vector<8x112xf32>
    %47 = math.exp %46 : vector<8x112xf32>
    %cst_25 = arith.constant 1.000000e+00 : f32
    %48 = vector.broadcast %cst_25 : f32 to vector<8x112xf32>
    %49 = arith.addf %48, %47 : vector<8x112xf32>
    %50 = tpu.reciprocal %49 {approx = true} : vector<8x112xf32> -> vector<8x112xf32>
    %51 = arith.mulf %43, %50 : vector<8x112xf32>
    %c1_26 = arith.constant 1 : index
    %c0_27 = arith.constant 0 : index
    %c0_28 = arith.constant 0 : index
    %52 = vector.load %arg4[%c1_26, %c0_27, %c0_28] : memref<2x8x112xf32, #tpu.memory_space<vmem>>, vector<1x8x112xf32>
    %53 = vector.shape_cast %52 : vector<1x8x112xf32> to vector<8x112xf32>
    %54 = vector.shape_cast %51 : vector<8x112xf32> to vector<1x8x112xf32>
    tpu.vector_store %arg4[%c1_26, %c0_27, %c0_28], %54 {strides = array<i32>} : memref<2x8x112xf32, #tpu.memory_space<vmem>>, vector<1x8x112xf32>,
    return
  }
  func.func @transform_0(%arg0: i32) -> (i32, i32, i32) {
    %c0_i32 = arith.constant 0 : i32
    %c0_i32_0 = arith.constant 0 : i32
    %c0_i32_1 = arith.constant 0 : i32
    return %arg0, %c0_i32, %c0_i32_0 : i32, i32, i32
  }
  func.func @transform_1(%arg0: i32) -> (i32, i32, i32) {
    %c0_i32 = arith.constant 0 : i32
    %c0_i32_0 = arith.constant 0 : i32
    %c0_i32_1 = arith.constant 0 : i32
    %c0_i32_2 = arith.constant 0 : i32
    return %c0_i32, %c0_i32_0, %c0_i32_1 : i32, i32, i32
  }
  func.func @transform_2(%arg0: i32) -> (i32, i32) {
    %c0_i32 = arith.constant 0 : i32
    %c0_i32_0 = arith.constant 0 : i32
    %c0_i32_1 = arith.constant 0 : i32
    return %c0_i32, %c0_i32_0 : i32, i32
  }
  func.func @transform_3(%arg0: i32) -> (i32, i32, i32) {
    %c0_i32 = arith.constant 0 : i32
    %c0_i32_0 = arith.constant 0 : i32
    %c0_i32_1 = arith.constant 0 : i32
    return %arg0, %c0_i32, %c0_i32_0 : i32, i32, i32
  }
}

</mosaic_0001>

<bundles_post_ra>
// kernel: tlayer_forward.1
= control target key start
LH: loop header
LB: loop body
LE: loop exit
PB: predicated region body
PF: predicated region fallthrough
CT: control target
= control target key end

     0   :  { %vm45_vm0 = vcmask 1043456   ;;  %v479_v2 = vmov 0.0   ;;  %vm480_vm1 = vmmov 0   ;;  %vm41_vm2 = vcmask 64512   ;;  %s482_s18 = smov 112   ;;  %s549_s0 = inlined_call_operand.vmem [shape: bf16[2,8,128], index: 0, kind: input, shape index: {}]   ;;  %s550_s1 = inlined_call_operand.vmem [shape: bf16[3,16,8], index: 1, kind: input, shape index: {}]   ;;  %s551_s2 = inlined_call_operand.vmem [shape: f32[16,1], index: 2, kind: input, shape index: {}]   ;;  %s552_s3 = inlined_call_operand.vmem [shape: f32[2,8,112], index: 3, kind: output, shape index: {}]  }
   0x1   :  { %v35_v0 = vld [vmem:[%s549_s0] sm:$0xf]  ;;  %v385_v1 = vld [vmem:[%s549_s0 + $0x4] sm:$0xf]  ;;  %403 = vmatprep.subr.bf16.mxu0 %v479_v2  ;;  %405 = vmatprep.mubr.msk.bf16.mxu0 %vm480_vm1, %v479_v2  ;;  %s481_s0 = smov 120   ;;  %v483_v8 = vmov 0  }
   0x2   :  { %v381_v3 = vcombine.low %v35_v0, %v35_v0  ;;  %v47_v4 = vsel %vm45_vm0, %v35_v0, 0  ;;  %v468_v5 = vld [vmem:[%s550_s1] sm:$0xff]   ;;  %421 = vmatprep.subr.bf16.mxu1 %v479_v2  ;;  %v218_v6 = vsel %vm45_vm0, %v385_v1, 0  ;;  %423 = vmatprep.mubr.msk.bf16.mxu1 %vm480_vm1, %v479_v2  ;;  %v387_v7 = vcombine.low %v385_v1, %v385_v1  ;;  %v24_v10 = vld [vmem:[%s551_s2 + $0x8] sm:$0xff]  ;;  %v470_v20 = vld [vmem:[%s550_s1 + $0x10] sm:$0xff]  }
   0x3   :  { %404 = vmatpush3.bf16.msra.mxu0 %v47_v4  ;;  %422 = vmatpush3.bf16.msra.mxu1 %v218_v6  ;;  %v23_v9 = vld [vmem:[%s551_s2] sm:$0xff]  ;;  %v469_v14 = vld [vmem:[%s550_s1 + $0x8] sm:$0xff]   ;;  %vm213_vm3 = vcmask 916480  }
   0x4   :  { %100 = vrot.lane.b32.xlu0 %v381_v3, %s481_s0  ;;  %156 = vrot.lane.b32.xlu1 %v381_v3, %s482_s18 }
   0x5   :  { %409 = vmatprep.subr.bf16.mxu0 %v479_v2  ;;  %427 = vmatprep.subr.bf16.mxu1 %v479_v2 }
   0x6   :  { %406 = vmatmul.mubr.msk.bf16.vlgmr.msra.gmra.mrb[0].mxu0 %vm41_vm2, %v468_v5  ;;  %424 = vmatmul.mubr.msk.bf16.vlgmr.msra.gmra.mrb[0].mxu1 %vm41_vm2, %v468_v5 }
   0x7   :  { %411 = vmatprep.mubr.msk.bf16.mxu0 %vm480_vm1, %v479_v2  ;;  %429 = vmatprep.mubr.msk.bf16.mxu1 %vm480_vm1, %v479_v2 }
   0x8   :  { %266 = vrot.lane.b32.xlu0 %v387_v7, %s481_s0  ;;  %314 = vrot.lane.b32.xlu1 %v387_v7, %s482_s18 }
   0x9   :  { %465 = vset.pattern.permute.xlu1 %v483_v8  ;;  %464 = vset.pattern.permute.xlu0 %v483_v8 }
   0xc   :  { %27 = vperm.xlu1 %465, %v23_v9   ;;  %32 = vperm.xlu0 %464, %v24_v10  }
  0x76   :  { %v101_v11 = vpop.permute.xlu0 %100  ;;  %v157_v12 = vpop.permute.xlu1 %156 }
  0x77   :  { %v106_v13 = vsel %vm45_vm0, %v101_v11, 0  ;;  %v162_v15 = vsel %vm45_vm0, %v157_v12, 0 }
  0x78   :  { %410 = vmatpush3.bf16.msra.mxu0 %v106_v13 }
  0x79   :  { %415 = vmatprep.subr.bf16.mxu0 %v479_v2 }
  0x7a   :  { %v267_v16 = vpop.permute.xlu0 %266  ;;  %v315_v17 = vpop.permute.xlu1 %314 }
  0x7b   :  { %v269_v18 = vsel %vm45_vm0, %v267_v16, 0  ;;  %412 = vmatmul.mubr.msk.bf16.vlgmr.msra.gmra.mrb[0].mxu0 %vm41_vm2, %v469_v14  ;;  %v317_v19 = vsel %vm45_vm0, %v315_v17, 0 }
  0x7c   :  { %428 = vmatpush3.bf16.msra.mxu1 %v269_v18  ;;  %416 = vmatpush3.bf16.msra.mxu0 %v162_v15 }
  0x7d   :  { %417 = vmatprep.mubr.msk.bf16.mxu0 %vm480_vm1, %v479_v2  ;;  %433 = vmatprep.subr.bf16.mxu1 %v479_v2 }
  0x7f   :  { %430 = vmatmul.mubr.msk.bf16.vlgmr.msra.gmra.mrb[0].mxu1 %vm41_vm2, %v469_v14 }
  0x80   :  { %434 = vmatpush3.bf16.msra.mxu1 %v317_v19  ;;  %435 = vmatprep.mubr.msk.bf16.mxu1 %vm480_vm1, %v479_v2 }
  0x87   :  { %418 = vmatmul.mubr.msk.bf16.vlgmr.msra.gmra.mrb[0].mxu0 %vm41_vm2, %v470_v20 }
  0x8b   :  { %436 = vmatmul.mubr.msk.bf16.vlgmr.msra.gmra.mrb[0].mxu1 %vm41_vm2, %v470_v20  ;;  %v33_v22 = vpop.permute.xlu0 %32  ;;  %v28_v40 = vpop.permute.xlu1 %27 }
 0x15a   :  { %v198_v21 = vpop.f32.mrb[0].mxu0 }
 0x15b   :  { %v419_v23 = vpop.f32.mrb[1].mxu0  ;;  %v439_v41 = vadd.f32 %v198_v21, %v28_v40 }
 0x15c   :  { %v201_v24 = vpop.f32.mrb[2].mxu0 }
 0x15d   :  { %v440_v25 = vadd.f32 %v201_v24, %v33_v22  ;;  %v420_v26 = vpop.f32.mrb[3].mxu0 }
 0x15e   :  { %v353_v27 = vpop.f32.mrb[0].mxu1 }
 0x15f   :  { %v207_v28 = vsub.f32 0.0, %v440_v25  ;;  %v437_v29 = vpop.f32.mrb[1].mxu1  ;;  %v441_v44 = vadd.f32 %v353_v27, %v28_v40 }
 0x160   :  { %v356_v30 = vpop.f32.mrb[2].mxu1 }
 0x161   :  { %v208_v31 = vmul.f32 1.442695, %v207_v28  ;;  %v442_v32 = vadd.f32 %v356_v30, %v33_v22  ;;  %v438_v33 = vpop.f32.mrb[3].mxu1 }
 0x163   :  { %471 = vpow2.f32 %v208_v31  ;;  %v362_v34 = vsub.f32 0.0, %v442_v32 }
 0x165   :  { %v363_v35 = vmul.f32 1.442695, %v362_v34 }
 0x167   :  { %473 = vpow2.f32 %v363_v35 }
 0x16d   :  { %v472_v36 = vpop.eup %471 }
 0x16e   :  { %v210_v37 = vadd.f32 1.0, %v472_v36 }
 0x170   :  { %475 = vrcp.f32 %v210_v37 }
 0x171   :  { %v474_v38 = vpop.eup %473 }
 0x172   :  { %v365_v39 = vadd.f32 1.0, %v474_v38 }
 0x174   :  { %477 = vrcp.f32 %v365_v39 }
 0x17a   :  { %v476_v42 = vpop.eup %475 }
 0x17b   :  { %v212_v43 = vmul.f32 %v476_v42, %v439_v41 }
 0x17d   :  { %214 = vst.msk [vmem:[%s552_s3] sm:$0xff] %vm213_vm3, %v212_v43 }
 0x17e   :  { %v478_v45 = vpop.eup %477 }
 0x17f   :  { %v367_v46 = vmul.f32 %v478_v45, %v441_v44 }
 0x181   :  { %390 = vst.msk [vmem:[%s552_s3 + $0x8] sm:$0xff] %vm213_vm3, %v367_v46 }

</bundles_post_ra>
